<compile_context>
chip_gen: v7x
topology: tpu7x:2x2x1
jax: 0.10.0
libtpu: 0.0.40
codegen_flags: <defaults>
</compile_context>

<pallas_src>
import functools

import jax
import jax.numpy as jnp
from jax import lax
from jax.experimental import pallas as pl
from jax.experimental.pallas import tpu as pltpu

DIM = 128          # embed_dim (fixed by the module)
NUM_HEADS = 1      # module default
HEAD_DIM = DIM // NUM_HEADS
SCALE = 1.0 / (HEAD_DIM ** 0.5)

# bf16 MXU operands (f32 accumulation): ~3x MXU throughput on v6e/v7x when compute-bound,
# but not bit-comparable with the f32 PyTorch module -> keep opt-in.
USE_BF16_MATMUL = False


def _mm(x):
    return x.astype(jnp.bfloat16) if USE_BF16_MATMUL else x


# ---------------------------------------------------------------------------
# Dense path: full (S, S) scores per batch block.
# ---------------------------------------------------------------------------
def _mha_dense_kernel(x_ref, wqkv_ref, bqkv_ref, wo_ref, bo_ref, o_ref):
    """x_ref: (BB, S, E); wqkv: (E, 3E) with scale folded into the Q columns."""
    E = x_ref.shape[-1]
    x = x_ref[...]

    # Fused QKV projection (batched dot_general -> no reshape, f32 accumulation).
    qkv = lax.dot_general(_mm(x), _mm(wqkv_ref[...]),
                          (((2,), (0,)), ((), ())),
                          preferred_element_type=jnp.float32) + bqkv_ref[...]
    q = qkv[:, :, :E]
    k = qkv[:, :, E:2 * E]
    v = qkv[:, :, 2 * E:]

    # scores[b, i, j] = q[b, i, :] . k[b, j, :]  (no explicit k^T)
    scores = lax.dot_general(_mm(q), _mm(k),
                             (((2,), (2,)), ((0,), (0,))),
                             preferred_element_type=jnp.float32)      # (BB, S, S)

    # Numerically-stable softmax; normalization applied after the PV matmul so the
    # 1/denom multiply is (BB, S, E)-sized instead of (BB, S, S)-sized.
    m = jnp.max(scores, axis=-1, keepdims=True)
    e = jnp.exp(scores - m)
    denom = jnp.sum(e, axis=-1, keepdims=True)

    pv = lax.dot_general(_mm(e), _mm(v),
                         (((2,), (1,)), ((0,), (0,))),
                         preferred_element_type=jnp.float32)          # (BB, S, E)
    attn = pv * pl.reciprocal(denom, approx=True)                     # EUP reciprocal

    out = lax.dot_general(_mm(attn), _mm(wo_ref[...]),
                          (((2,), (0,)), ((), ())),
                          preferred_element_type=jnp.float32) + bo_ref[...]
    o_ref[...] = out.astype(o_ref.dtype)


# ---------------------------------------------------------------------------
# Flash path: KV-tiled online softmax (bounded VMEM, for large S).
# ---------------------------------------------------------------------------
def _mha_flash_kernel(x_full_ref, x_kv_ref, wqkv_ref, bqkv_ref, wo_ref, bo_ref,
                      o_ref, q_scr, m_scr, l_scr, acc_scr):
    kv = pl.program_id(1)
    E = x_full_ref.shape[-1]

    @pl.when(kv == 0)
    def _():
        # Q projection once per batch block (scale already folded into wqkv[:, :E]).
        q = lax.dot_general(_mm(x_full_ref[...]), _mm(wqkv_ref[:, :E]),
                            (((2,), (0,)), ((), ())),
                            preferred_element_type=jnp.float32) + bqkv_ref[:, :E]
        q_scr[...] = q
        m_scr[...] = jnp.full(m_scr.shape, -jnp.inf, jnp.float32)
        l_scr[...] = jnp.zeros(l_scr.shape, jnp.float32)
        acc_scr[...] = jnp.zeros(acc_scr.shape, jnp.float32)

    # K/V projection for this KV tile only.
    kvp = lax.dot_general(_mm(x_kv_ref[...]), _mm(wqkv_ref[:, E:]),
                          (((2,), (0,)), ((), ())),
                          preferred_element_type=jnp.float32) + bqkv_ref[:, E:]
    k = kvp[:, :, :E]
    v = kvp[:, :, E:]

    s = lax.dot_general(_mm(q_scr[...]), _mm(k),
                        (((2,), (2,)), ((0,), (0,))),
                        preferred_element_type=jnp.float32)           # (BB, S, T)

    m_prev = m_scr[...]
    m_new = jnp.maximum(m_prev, jnp.max(s, axis=-1, keepdims=True))
    alpha = jnp.exp(m_prev - m_new)
    e = jnp.exp(s - m_new)
    l_scr[...] = alpha * l_scr[...] + jnp.sum(e, axis=-1, keepdims=True)
    pv = lax.dot_general(_mm(e), _mm(v),
                         (((2,), (1,)), ((0,), (0,))),
                         preferred_element_type=jnp.float32)
    acc_scr[...] = alpha * acc_scr[...] + pv
    m_scr[...] = m_new

    @pl.when(kv == pl.num_programs(1) - 1)
    def _():
        attn = acc_scr[...] * pl.reciprocal(l_scr[...], approx=True)
        out = lax.dot_general(_mm(attn), _mm(wo_ref[...]),
                              (((2,), (0,)), ((), ())),
                              preferred_element_type=jnp.float32) + bo_ref[...]
        o_ref[...] = out.astype(o_ref.dtype)


# ---------------------------------------------------------------------------
# VMEM budgeting / block selection (generation-aware).
# ---------------------------------------------------------------------------
def _tpu_vmem_capacity_bytes():
    try:
        return int(pltpu.get_tpu_info().vmem_capacity_bytes)
    except Exception:
        return 64 * 2 ** 20            # conservative (v7x-sized) fallback


def _budgets():
    cap = _tpu_vmem_capacity_bytes()
    small = cap <= 80 * 2 ** 20        # v7x-class: 64 MiB per TensorCore
    if small:
        return 36 * 2 ** 20, 56 * 2 ** 20, True
    return 88 * 2 ** 20, 104 * 2 ** 20, False      # v5e / v6e: 128 MiB


def _vmem_bytes_dense(bb, S, E):
    f32 = 4
    io = 2 * 2 * bb * S * E * f32                          # x + out, double-buffered
    wts = 2 * (E * 3 * E + 3 * E + E * E + E) * f32
    inter = (3 * bb * S * E            # qkv
             + 3 * bb * S * E          # q, k, v slices
             + 2 * bb * S * S          # scores, e
             + 2 * bb * S * E          # pv/attn, out
             ) * f32
    return io + wts + inter


def _vmem_bytes_flash(bb, S, T, E):
    f32 = 4
    io = 2 * 2 * bb * S * E * f32                          # x_full + out, double-buffered
    xkv = 2 * bb * T * E * f32                             # KV slice of x, double-buffered
    wts = 2 * (E * 3 * E + 3 * E + E * E + E) * f32
    scratch = (2 * bb * S * E + 2 * bb * S) * f32          # q, acc, m, l
    inter = (4 * bb * T * E            # kv proj, k, v
             + 2 * bb * S * T          # s, e
             + 2 * bb * S * E          # pv, out
             ) * f32
    return io + xkv + wts + scratch + inter


def _choose_bb(B, S, bytes_fn, budget, prefer_multi_step):
    divisors = [d for d in range(1, B + 1) if B % d == 0]
    fitting = [d for d in divisors if bytes_fn(d) <= budget]
    if not fitting:
        return 1
    if prefer_multi_step and B >= 2:
        # v7x has 2 TensorCores: keep >=2 steps on the "parallel" batch axis so both get work.
        multi = [d for d in fitting if B // d >= 2]
        if multi:
            fitting = multi
    for d in fitting:                  # smallest divisor that already fills the MXU
        if d * S >= 512:
            return d
    return fitting[-1]                 # tiny problems: take everything in one step


# ---------------------------------------------------------------------------
# Wrapper.
# ---------------------------------------------------------------------------
@functools.partial(jax.jit, static_argnames=("force_flash",))
def mha_self_attention(x, w_qkv, b_qkv, wo_t, bo, *, force_flash=False):
    """x: (B, S, E) float32. w_qkv: (E, 3E) with 1/sqrt(d) folded into the Q columns."""
    B, S, E = x.shape
    assert E == DIM

    tile_budget, limit_cap, small_vmem = _budgets()
    flash_threshold = 1024 if small_vmem else 2048

    kv_tile = None
    if force_flash or S > flash_threshold or _vmem_bytes_dense(1, S, E) > tile_budget:
        cands = [t for t in (512, 256, 128) if S % t == 0]
        multi = [t for t in cands if S // t >= 2]
        if multi:
            kv_tile = multi[0]
        elif cands:
            kv_tile = cands[0]
        # TODO(synk): if S is large but not a multiple of 128, pad S in the caller; we fall
        # back to the dense path here.
    use_flash = kv_tile is not None

    if use_flash:
        bytes_fn = lambda bb: _vmem_bytes_flash(bb, S, kv_tile, E)
    else:
        bytes_fn = lambda bb: _vmem_bytes_dense(bb, S, E)
    BB = _choose_bb(B, S, bytes_fn, tile_budget, prefer_multi_step=small_vmem)
    vmem_limit = int(min(limit_cap, max(32 * 2 ** 20, 2 * bytes_fn(BB))))

    flops = (2 * B * S * E * (3 * E)       # fused QKV projection
             + 2 * 2 * B * S * S * E       # q@k^T and e@v
             + 2 * B * S * E * E)          # output projection
    cost = pl.CostEstimate(
        flops=flops,
        transcendentals=B * S * S + B * S,
        bytes_accessed=(2 * B * S * E + E * 3 * E + 3 * E + E * E + E) * 4)

    if not use_flash:
        return pl.pallas_call(
            _mha_dense_kernel,
            out_shape=jax.ShapeDtypeStruct((B, S, E), x.dtype),
            grid_spec=pltpu.PrefetchScalarGridSpec(
                num_scalar_prefetch=0,
                grid=(B // BB,),
                in_specs=[
                    pl.BlockSpec((BB, S, E), lambda b: (b, 0, 0)),    # x
                    pl.BlockSpec((E, 3 * E), lambda b: (0, 0)),       # W_qkv (pre-transposed)
                    pl.BlockSpec((1, 3 * E), lambda b: (0, 0)),       # b_qkv
                    pl.BlockSpec((E, E),     lambda b: (0, 0)),       # W_out^T
                    pl.BlockSpec((1, E),     lambda b: (0, 0)),       # b_out
                ],
                out_specs=pl.BlockSpec((BB, S, E), lambda b: (b, 0, 0)),
            ),
            compiler_params=pltpu.CompilerParams(
                dimension_semantics=("parallel",),
                vmem_limit_bytes=vmem_limit,
            ),
            cost_estimate=cost,
        )(x, w_qkv, b_qkv, wo_t, bo)

    n_kv = S // kv_tile
    return pl.pallas_call(
        _mha_flash_kernel,
        out_shape=jax.ShapeDtypeStruct((B, S, E), x.dtype),
        grid_spec=pltpu.PrefetchScalarGridSpec(
            num_scalar_prefetch=0,
            grid=(B // BB, n_kv),
            in_specs=[
                pl.BlockSpec((BB, S, E),       lambda b, kv: (b, 0, 0)),   # x (full, Q proj)
                pl.BlockSpec((BB, kv_tile, E), lambda b, kv: (b, kv, 0)),  # x (KV tile)
                pl.BlockSpec((E, 3 * E),       lambda b, kv: (0, 0)),
                pl.BlockSpec((1, 3 * E),       lambda b, kv: (0, 0)),
                pl.BlockSpec((E, E),           lambda b, kv: (0, 0)),
                pl.BlockSpec((1, E),           lambda b, kv: (0, 0)),
            ],
            out_specs=pl.BlockSpec((BB, S, E), lambda b, kv: (b, 0, 0)),
            scratch_shapes=[
                pltpu.VMEM((BB, S, E), jnp.float32),   # q
                pltpu.VMEM((BB, S, 1), jnp.float32),   # running max
                pltpu.VMEM((BB, S, 1), jnp.float32),   # running denom
                pltpu.VMEM((BB, S, E), jnp.float32),   # accumulator
            ],
        ),
        compiler_params=pltpu.CompilerParams(
            dimension_semantics=("parallel", "arbitrary"),
            vmem_limit_bytes=vmem_limit,
        ),
        cost_estimate=cost,
    )(x, x, w_qkv, b_qkv, wo_t, bo)


def prepare_weights(in_proj_weight, in_proj_bias, out_proj_weight, out_proj_bias):
    """Fuse + pre-transpose nn.MultiheadAttention params; fold 1/sqrt(d) into Q columns."""
    E = out_proj_weight.shape[0]
    w_qkv = in_proj_weight.T                         # (E, 3E): [Wq^T | Wk^T | Wv^T]
    b_qkv = in_proj_bias.reshape(1, 3 * E)
    scale_vec = jnp.concatenate([jnp.full((E,), SCALE, jnp.float32),
                                 jnp.ones((2 * E,), jnp.float32)])
    w_qkv = w_qkv * scale_vec[None, :]
    b_qkv = b_qkv * scale_vec[None, :]
    wo_t = out_proj_weight.T                         # (E, E)
    bo = out_proj_bias.reshape(1, E)                 # (1, E)
    return w_qkv, b_qkv, wo_t, bo


def _reference(x, in_proj_weight, in_proj_bias, out_proj_weight, out_proj_bias):
    """Pure-JAX reference of the same math (unfused PyTorch-style weights)."""
    qkv = jnp.einsum("bse,fe->bsf", x, in_proj_weight) + in_proj_bias
    q, k, v = jnp.split(qkv, 3, axis=-1)
    scores = jnp.einsum("bqd,bkd->bqk", q, k) / (HEAD_DIM ** 0.5)
    p = jax.nn.softmax(scores, axis=-1)
    attn = jnp.einsum("bqk,bkd->bqd", p, v)
    return attn @ out_proj_weight.T + out_proj_bias


if __name__ == "__main__":
    B, S, E = 2, 8, DIM

    key = jax.random.PRNGKey(0)
    kx, kw, kb, kwo, kbo, kx2 = jax.random.split(key, 6)

    # nn.MultiheadAttention internal shapes: in_proj_weight (3E, E), in_proj_bias (3E,),
    # out_proj.weight (E, E), out_proj.bias (E,).
    in_proj_weight = jax.random.normal(kw, (3 * E, E), dtype=jnp.float32) * 0.02
    in_proj_bias = jax.random.normal(kb, (3 * E,), dtype=jnp.float32) * 0.02
    out_proj_weight = jax.random.normal(kwo, (E, E), dtype=jnp.float32) * 0.02
    out_proj_bias = jax.random.normal(kbo, (E,), dtype=jnp.float32) * 0.02

    w_qkv, b_qkv, wo_t, bo = prepare_weights(
        in_proj_weight, in_proj_bias, out_proj_weight, out_proj_bias)

    # --- Dense path (small S) ---
    x = jax.random.normal(kx, (B, S, E), dtype=jnp.float32)
    out = jax.block_until_ready(mha_self_attention(x, w_qkv, b_qkv, wo_t, bo))
    ref = _reference(x, in_proj_weight, in_proj_bias, out_proj_weight, out_proj_bias)
    assert out.shape == (B, S, E)
    assert jnp.allclose(out, ref, atol=1e-3, rtol=1e-3), "dense path mismatch vs reference"

    # --- Flash (KV-tiled) path, forced at a modest S so the multi-step accumulator is tested ---
    S2 = 256
    x2 = jax.random.normal(kx2, (B, S2, E), dtype=jnp.float32)
    out2 = jax.block_until_ready(
        mha_self_attention(x2, w_qkv, b_qkv, wo_t, bo, force_flash=True))
    ref2 = _reference(x2, in_proj_weight, in_proj_bias, out_proj_weight, out_proj_bias)
    assert out2.shape == (B, S2, E)
    assert jnp.allclose(out2, ref2, atol=1e-3, rtol=1e-3), "flash path mismatch vs reference"

    print("KERNEL_OK")
</pallas_src>

<mosaic_0001>
module attributes {stable_mosaic.version = 11 : i64} {
  func.func @_mha_dense_kernel(%arg0: i32, %arg1: memref<1x8x128xf32, #tpu.memory_space<vmem>>, %arg2: memref<128x384xf32, #tpu.memory_space<vmem>>, %arg3: memref<1x384xf32, #tpu.memory_space<vmem>>, %arg4: memref<128x128xf32, #tpu.memory_space<vmem>>, %arg5: memref<1x128xf32, #tpu.memory_space<vmem>>, %arg6: memref<1x8x128xf32, #tpu.memory_space<vmem>>) attributes {dimension_semantics = [#tpu.dimension_semantics<parallel>], iteration_bounds = array<i64: 2>, scalar_prefetch = 0 : i64, scratch_operands = 0 : i64, tpu.core_type = #tpu.core_type<tc>, window_params = [{transform_indices = @transform_0, window_bounds = array<i64: 1, 8, 128>}, {pipeline_mode = #tpu.pipeline_mode<synchronous>, transform_indices = @transform_1, window_bounds = array<i64: 128, 384>}, {pipeline_mode = #tpu.pipeline_mode<synchronous>, transform_indices = @transform_2, window_bounds = array<i64: 1, 384>}, {pipeline_mode = #tpu.pipeline_mode<synchronous>, transform_indices = @transform_3, window_bounds = array<i64: 128, 128>}, {pipeline_mode = #tpu.pipeline_mode<synchronous>, transform_indices = @transform_4, window_bounds = array<i64: 1, 128>}, {transform_indices = @transform_5, window_bounds = array<i64: 1, 8, 128>}]} {
    %c0 = arith.constant 0 : index
    %c0_0 = arith.constant 0 : index
    %c0_1 = arith.constant 0 : index
    %0 = vector.load %arg1[%c0, %c0_0, %c0_1] : memref<1x8x128xf32, #tpu.memory_space<vmem>>, vector<1x8x128xf32>
    %c0_2 = arith.constant 0 : index
    %c0_3 = arith.constant 0 : index
    %1 = vector.load %arg2[%c0_2, %c0_3] : memref<128x384xf32, #tpu.memory_space<vmem>>, vector<128x384xf32>
    %cst = arith.constant dense<0.000000e+00> : vector<1x8x384xf32>
    %2 = tpu.matmul %0, %1, %cst {dimension_numbers = #tpu.dot_dimension_numbers<[2], [0], [0, 1], [1], [0, 0, 0, 1, 1, 1], [], []>} : vector<1x8x128xf32>, vector<128x384xf32>, vector<1x8x384xf32> -> vector<1x8x384xf32>
    %c0_4 = arith.constant 0 : index
    %c0_5 = arith.constant 0 : index
    %3 = vector.load %arg3[%c0_4, %c0_5] : memref<1x384xf32, #tpu.memory_space<vmem>>, vector<1x384xf32>
    %4 = vector.shape_cast %3 : vector<1x384xf32> to vector<1x1x384xf32>
    %5 = vector.broadcast %4 : vector<1x1x384xf32> to vector<1x8x384xf32>
    %6 = arith.addf %2, %5 : vector<1x8x384xf32>
    %7 = vector.extract_strided_slice %6 {offsets = [0, 0, 0], sizes = [1, 8, 128], strides = [1, 1, 1]} : vector<1x8x384xf32> to vector<1x8x128xf32>
    %8 = vector.extract_strided_slice %6 {offsets = [0, 0, 128], sizes = [1, 8, 128], strides = [1, 1, 1]} : vector<1x8x384xf32> to vector<1x8x128xf32>
    %9 = vector.extract_strided_slice %6 {offsets = [0, 0, 256], sizes = [1, 8, 128], strides = [1, 1, 1]} : vector<1x8x384xf32> to vector<1x8x128xf32>
    %cst_6 = arith.constant dense<0.000000e+00> : vector<1x8x8xf32>
    %10 = tpu.matmul %7, %8, %cst_6 {dimension_numbers = #tpu.dot_dimension_numbers<[2], [2], [1], [1], [0, 0, 0, 1, 1, 1], [0], [0]>} : vector<1x8x128xf32>, vector<1x8x128xf32>, vector<1x8x8xf32> -> vector<1x8x8xf32>
    %cst_7 = arith.constant dense<0xFF800000> : vector<1x8xf32>
    %11 = vector.multi_reduction <maximumf>, %10, %cst_7 [2] : vector<1x8x8xf32> to vector<1x8xf32>
    %12 = vector.shape_cast %11 : vector<1x8xf32> to vector<1x8x1xf32>
    %13 = vector.broadcast %12 : vector<1x8x1xf32> to vector<1x8x8xf32>
    %14 = arith.subf %10, %13 : vector<1x8x8xf32>
    %15 = math.exp %14 : vector<1x8x8xf32>
    %cst_8 = arith.constant dense<0.000000e+00> : vector<1x8xf32>
    %16 = vector.multi_reduction <add>, %15, %cst_8 [2] : vector<1x8x8xf32> to vector<1x8xf32>
    %17 = vector.shape_cast %16 : vector<1x8xf32> to vector<1x8x1xf32>
    %cst_9 = arith.constant dense<0.000000e+00> : vector<1x8x128xf32>
    %18 = tpu.matmul %15, %9, %cst_9 {dimension_numbers = #tpu.dot_dimension_numbers<[2], [1], [1], [2], [0, 0, 0, 1, 1, 2], [0], [0]>} : vector<1x8x8xf32>, vector<1x8x128xf32>, vector<1x8x128xf32> -> vector<1x8x128xf32>
    %19 = tpu.reciprocal %17 {approx = true} : vector<1x8x1xf32> -> vector<1x8x1xf32>
    %20 = vector.broadcast %19 : vector<1x8x1xf32> to vector<1x8x128xf32>
    %21 = arith.mulf %18, %20 : vector<1x8x128xf32>
    %c0_10 = arith.constant 0 : index
    %c0_11 = arith.constant 0 : index
    %22 = vector.load %arg4[%c0_10, %c0_11] : memref<128x128xf32, #tpu.memory_space<vmem>>, vector<128x128xf32>
    %cst_12 = arith.constant dense<0.000000e+00> : vector<1x8x128xf32>
    %23 = tpu.matmul %21, %22, %cst_12 {dimension_numbers = #tpu.dot_dimension_numbers<[2], [0], [0, 1], [1], [0, 0, 0, 1, 1, 1], [], []>} : vector<1x8x128xf32>, vector<128x128xf32>, vector<1x8x128xf32> -> vector<1x8x128xf32>
    %c0_13 = arith.constant 0 : index
    %c0_14 = arith.constant 0 : index
    %24 = vector.load %arg5[%c0_13, %c0_14] : memref<1x128xf32, #tpu.memory_space<vmem>>, vector<1x128xf32>
    %25 = vector.shape_cast %24 : vector<1x128xf32> to vector<1x1x128xf32>
    %26 = vector.broadcast %25 : vector<1x1x128xf32> to vector<1x8x128xf32>
    %27 = arith.addf %23, %26 : vector<1x8x128xf32>
    %c0_15 = arith.constant 0 : index
    %c0_16 = arith.constant 0 : index
    %c0_17 = arith.constant 0 : index
    %28 = vector.load %arg6[%c0_15, %c0_16, %c0_17] : memref<1x8x128xf32, #tpu.memory_space<vmem>>, vector<1x8x128xf32>
    tpu.vector_store %arg6[%c0_15, %c0_16, %c0_17], %27 {strides = array<i32>} : memref<1x8x128xf32, #tpu.memory_space<vmem>>, vector<1x8x128xf32>,
    return
  }
  func.func @transform_0(%arg0: i32) -> (i32, i32, i32) {
    %c0_i32 = arith.constant 0 : i32
    %c0_i32_0 = arith.constant 0 : i32
    %c0_i32_1 = arith.constant 0 : i32
    return %arg0, %c0_i32, %c0_i32_0 : i32, i32, i32
  }
  func.func @transform_1(%arg0: i32) -> (i32, i32) {
    %c0_i32 = arith.constant 0 : i32
    %c0_i32_0 = arith.constant 0 : i32
    %c0_i32_1 = arith.constant 0 : i32
    return %c0_i32, %c0_i32_0 : i32, i32
  }
  func.func @transform_2(%arg0: i32) -> (i32, i32) {
    %c0_i32 = arith.constant 0 : i32
    %c0_i32_0 = arith.constant 0 : i32
    %c0_i32_1 = arith.constant 0 : i32
    return %c0_i32, %c0_i32_0 : i32, i32
  }
  func.func @transform_3(%arg0: i32) -> (i32, i32) {
    %c0_i32 = arith.constant 0 : i32
    %c0_i32_0 = arith.constant 0 : i32
    %c0_i32_1 = arith.constant 0 : i32
    return %c0_i32, %c0_i32_0 : i32, i32
  }
  func.func @transform_4(%arg0: i32) -> (i32, i32) {
    %c0_i32 = arith.constant 0 : i32
    %c0_i32_0 = arith.constant 0 : i32
    %c0_i32_1 = arith.constant 0 : i32
    return %c0_i32, %c0_i32_0 : i32, i32
  }
  func.func @transform_5(%arg0: i32) -> (i32, i32, i32) {
    %c0_i32 = arith.constant 0 : i32
    %c0_i32_0 = arith.constant 0 : i32
    %c0_i32_1 = arith.constant 0 : i32
    return %arg0, %c0_i32, %c0_i32_0 : i32, i32, i32
  }
}

</mosaic_0001>

<bundles_post_ra>
// kernel: mha_self_attention.1
= control target key start
LH: loop header
LB: loop body
LE: loop exit
PB: predicated region body
PF: predicated region fallthrough
CT: control target
= control target key end

     0   :  { %10 = vsyncpa [#allocation3], 0  ;;  %s1590_s0 = inlined_call_operand.hbm [shape: f32[2,8,128], index: 0, kind: input, shape index: {}]   ;;  %s1591_s1 = inlined_call_operand.hbm [shape: f32[128,384], index: 1, kind: input, shape index: {}]   ;;  %s1592_s2 = inlined_call_operand.vmem [shape: f32[1,384], index: 2, kind: input, shape index: {}]   ;;  %s1593_s3 = inlined_call_operand.hbm [shape: f32[128,128], index: 3, kind: input, shape index: {}]   ;;  %s1594_s4 = inlined_call_operand.vmem [shape: f32[1,128], index: 4, kind: input, shape index: {}]   ;;  %s1595_s5 = inlined_call_operand.hbm [shape: f32[2,8,128], index: 5, kind: output, shape index: {}]  }
   0x1   :  { %12 = vsyncpa [#allocation3 + $0x1], 0 }
   0x2   :  { %13 = vsyncpa [#allocation6], 0 }
   0x3   :  { %14 = vsyncpa [#allocation4], 0 }
   0x4   :  { %16 = vsyncpa [#allocation4 + $0x1], 0  ;;  %s1321_s18 = smov 0   ;;  %s1323_s19 = smov 0  }
   0x5   :  { %s1325_s20 = smov 0   ;;  %s1327_s21 = smov 0  }
   0x6 LB: > { %s1342_s22 = sadd.s32 4294967295, %s1278_s21   ;;  %s828_s23 = sadd.s32 4294967294, %s1278_s21   ;;  %s1278_s21 = sphi %s1327_s21, %s1615_s21   ;;  %s1274_s20 = sphi %s1325_s20, %s1614_s20   ;;  %s1270_s19 = sphi %s1323_s19, %s1613_s19   ;;  %s1266_s18 = sphi %s1321_s18, %s1612_s18  }
   0x7   : > { %p42_p0 = scmp.ne.s32.totalorder %s1270_s19, %s1266_s18  ;;  %p1596_p1 = scmp.eq.s32.totalorder %s1342_s22, 0 }
   0x8   : > { %p156_p3 = scmp.eq.s32.totalorder %s828_s23, 1  ;;  %p829_p5 = scmp.ge.s32.totalorder %s1278_s21, 1 }
   0x9   : > { %p1351_p4 = por %p1596_p1, %p42_p0  ;;  %p163_p7 = scmp.lt.s32.totalorder %s1278_s21, 3 }
   0xa   : > { %p1356_p6 = por %p156_p3, %p42_p0  ;;  %s1280_s27 = smov [#allocation5]  }
   0xb   : > { %s1599_s24 = scalar_select %p1351_p4, 1, 0 }
   0xc   : > { %s1600_s25 = scalar_select %p1356_p6, 1, 0 }
   0xd   : > { %p1361_p8 = pnand %p829_p5, %p163_p7  ;;  %s175_s28 = sshll.u32 %s1280_s27, 4  ;;  %s1365_s28 = int_to_ptr.vmem [resolvable:$true] %s175_s28 }
   0xe   : > { %s1281_s30 = smov [#allocation7]   ;;  %s1122_s9 = scalar_lea.hbm %s1591_s1, 6144 }
   0xf   : > { %p1056_p9 = pneg %p1361_p8  ;;  %s191_s6 = sshll.u32 %s1281_s30, 4  ;;  %s1376_s6 = int_to_ptr.vmem [resolvable:$true] %s191_s6 }
  0x10   : > { %p1123_p12 = scmp.ne.s32.totalorder %s1591_s1, %s1122_s9  ;;  %p1129_p5 = scmp.lt.u32.totalorder %s1122_s9, %s1591_s1 }
  0x11   : > { %p1372_p11 = pnand %p1056_p9, %p1596_p1 }
  0x13   : > { %p1124_p13 = pneg %p1372_p11 }
  0x15   : > { %p1125_p0 = pnand %p1124_p13, %p1123_p12 }
  0x17   : > { %p1126_p3 = pneg %p1125_p0 }
  0x19   : > { %p1131_p7 = pnand %p1129_p5, %p1126_p3 }
  0x1b   : > { %1134 = shalt.err (!%p1131_p7)
}
  0x1c   : > { %s1135_s14 = scalar_lea.vmem %s1365_s28, 6144  ;;  %p1143_p2 = scmp.lt.s32.totalorder %s1365_s28, %s1365_s28 }
  0x1d   : > { %p1136_p9 = scmp.ne.s32.totalorder %s1365_s28, %s1135_s14  ;;  %p1144_p12 = scmp.lt.s32.totalorder %s1135_s14, %s1135_s14 }
  0x1f   : > { %p1138_p10 = pnand %p1136_p9, %p1124_p13  ;;  %p1145_p0 = por %p1144_p12, %p1143_p2 }
  0x21   : > { %p1139_p1 = pneg %p1138_p10 }
  0x23   : > { %p1146_p6 = pnand %p1145_p0, %p1139_p1 }
  0x25   : > { %1149 = shalt.err (!%p1146_p6)
}
  0x26   : > { %s1282_s15 = smov 384   ;;  %s1283_s16 = smov 24  }
  0x27   : > { %1059 = dma.hbm_to_vmem [thread:$0]  (!%p1372_p11), %s1591_s1, 6144, %s1365_s28, [#allocation6], %s1282_s15, %s1282_s15, %s1283_s16  }
  0x28   : > { %s1150_s7 = scalar_lea.hbm %s1593_s3, 2048 }
  0x29   : > { %p1151_p2 = scmp.ne.s32.totalorder %s1593_s3, %s1150_s7  ;;  %p1157_p10 = scmp.lt.u32.totalorder %s1150_s7, %s1593_s3 }
  0x2b   : > { %p1153_p1 = pnand %p1151_p2, %p1124_p13 }
  0x2d   : > { %p1154_p6 = pneg %p1153_p1 }
  0x2f   : > { %p1159_p3 = pnand %p1157_p10, %p1154_p6 }
  0x31   : > { %1162 = shalt.err (!%p1159_p3)
}
  0x32   : > { %s1163_s28 = scalar_lea.vmem %s1376_s6, 2048  ;;  %p1171_p12 = scmp.lt.s32.totalorder %s1376_s6, %s1376_s6 }
  0x33   : > { %p1164_p5 = scmp.ne.s32.totalorder %s1376_s6, %s1163_s28  ;;  %p1172_p0 = scmp.lt.s32.totalorder %s1163_s28, %s1163_s28 }
  0x35   : > { %p1166_p7 = pnand %p1164_p5, %p1124_p13  ;;  %p1173_p2 = por %p1172_p0, %p1171_p12 }
  0x37   : > { %p1167_p9 = pneg %p1166_p7 }
  0x39   : > { %p1174_p1 = pnand %p1173_p2, %p1167_p9 }
  0x3b   : > { %1177 = shalt.err (!%p1174_p1)
}
  0x3c   : > { %s1284_s12 = smov 128   ;;  %s1285_s13 = smov 8  }
  0x3d   : > { %1062 = dma.hbm_to_vmem [thread:$0]  (!%p1372_p11), %s1593_s3, 2048, %s1376_s6, [#allocation6], %s1284_s12, %s1284_s12, %s1285_s13  }
  0x3e   : > { %s1431_s16 = sadd.s32 1, %s1278_s21   ;;  %s29_s23 = sadd.s32 1, %s1274_s20 }
  0x3f   : > { %s26_s17 = ssub.s32 %s1278_s21, %s1431_s16  ;;  %p36_p6 = scmp.ne.s32.totalorder %s1274_s20, %s1270_s19 }
  0x40   : > { %p27_p13 = scmp.eq.s32.totalorder %s26_s17, 0  ;;  %p37_p10 = scmp.eq.s32.totalorder %s1278_s21, 0 }
  0x41   : > { %p1603_p5 = scmp.eq.s32.totalorder %s1342_s22, 1  ;;  %p1073_p9 = scmp.lt.s32.totalorder %s1278_s21, 2 }
  0x42   : > { %s1440_s27 = scalar_select %p27_p13, %s1274_s20, %s29_s23  }
  0x43   : > { %p38_p3 = por %p37_p10, %p36_p6  ;;  %p1444_p7 = por %p1603_p5, %p36_p6 }
  0x44   : > { %s208_s29 = sand.u32 1, %s1274_s20   ;;  %s834_s6 = sshll.u32 %s1278_s21, 7 }
  0x45   : > { %s1604_s30 = scalar_select %p1444_p7, 1, 0 }
  0x46   : > { %s833_s7 = sshll.u32 %s208_s29, 3  ;;  %s1454_s10 = scalar_lea.hbm %s1590_s0, %s834_s6 }
  0x47   : > { %s212_s11 = scalar_lea.vmem [#allocation2], %s833_s7  ;;  %p1458_p11 = pnand %p1073_p9, %p38_p3 }
  0x48   : > { %s219_s28 = sshll.u32 %s212_s11, 4  ;;  %s209_s13 = scalar_lea.sflag [#allocation3], %s208_s29  ;;  %s1456_s28 = int_to_ptr.vmem [resolvable:$true] %s219_s28 }
  0x49   : > { %s1178_s14 = scalar_lea.hbm %s1454_s10, 128  ;;  %p1180_p0 = pneg %p1458_p11 }
  0x4a   : > { %p1179_p12 = scmp.ne.s32.totalorder %s1454_s10, %s1178_s14  ;;  %s1183_s23 = scalar_lea.hbm %s1590_s0, 256 }
  0x4b   : > { %p1184_p13 = scmp.lt.u32.totalorder %s1454_s10, %s1590_s0  ;;  %p1185_p6 = scmp.lt.u32.totalorder %s1183_s23, %s1178_s14 }
  0x4c   : > { %p1181_p2 = pnand %p1180_p0, %p1179_p12  ;;  %p1187_p3 = scmp.lt.u32.totalorder %s1178_s14, %s1454_s10 }
  0x4d   : > { %p1186_p10 = por %p1185_p6, %p1184_p13 }
  0x4e   : > { %p1182_p1 = pneg %p1181_p2 }
  0x4f   : > { %p1188_p5 = por %p1187_p3, %p1186_p10 }
  0x51   : > { %p1189_p9 = pnand %p1188_p5, %p1182_p1 }
  0x53   : > { %1192 = shalt.err (!%p1189_p9)
}
  0x54   : > { %s1193_s29 = scalar_lea.vmem %s1456_s28, 128  ;;  %s1286_s8 = smov [#allocation2]  }
  0x55   : > { %p1194_p12 = scmp.ne.s32.totalorder %s1456_s28, %s1193_s29  ;;  %s1198_s9 = sshll.u32 %s1286_s8, 4  ;;  %s1199_s9 = int_to_ptr.vmem [resolvable:$false] %s1198_s9 }
  0x56   : > { %s1200_s11 = scalar_lea.vmem %s1199_s9, 256  ;;  %p1201_p4 = scmp.lt.s32.totalorder %s1456_s28, %s1199_s9 }
  0x57   : > { %p1196_p2 = pnand %p1194_p12, %p1180_p0  ;;  %p1202_p13 = scmp.lt.s32.totalorder %s1200_s11, %s1193_s29 }
  0x59   : > { %p1197_p7 = pneg %p1196_p2  ;;  %p1203_p6 = por %p1202_p13, %p1201_p4 }
  0x5b   : > { %p1204_p10 = pnand %p1203_p6, %p1197_p7 }
  0x5d   : > { %1207 = shalt.err (!%p1204_p10)
}
  0x5e   : > { %1066 = dma.hbm_to_vmem [thread:$0]  (!%p1458_p11), %s1454_s10, 128, %s1456_s28, %s209_s13  }
  0x5f   : > { %228 = sbr.rel (%p1361_p8) target bundleno = 1171 (0x493), region = 40  ;;  %s1490_s14 = sand.u32 (!%p1361_p8), 1, %s1270_s19  }
  0x60   : > { %s836_s15 = sshll.u32 (!%p1361_p8), %s1490_s14, 3  ;;  %s231_s17 = scalar_lea.sflag (!%p1361_p8), [#allocation3], %s1490_s14 }
  0x61   : > { %s1496_s23 = scalar_lea.vmem (!%p1361_p8), [#allocation2], %s836_s15  ;;  %p1606_p4 = scmp.ne.s32.totalorder (!%p1361_p8), %s1599_s24, 0 }
  0x66   : > { %1253 = dma.done.wait (%p1606_p4), %s231_s17, 128  }
  0x67   : > { %1255 = vsyncadd (%p1606_p4), %s231_s17, 4294967168  ;;  %p1607_p7 = scmp.eq.s32.totalorder %s1342_s22, 0 }
  0x69   : > { %1257 = dma.done.wait (%p1607_p7), [#allocation6], 8192   ;;  %p1608_p8 = pmov %p1607_p7 }
  0x6a   : > { %v1287_v0 = vmov 0.0   ;;  %v1288_v1 = vmov 0.0|0.0   ;;  %v271_v2 = vld [vmem:[#allocation5 + $0x8] sm:$0xff]  ;;  %v274_v3 = vld [vmem:[#allocation5 + $0x20] sm:$0xff]  ;;  %v273_v6 = vld [vmem:[#allocation5 + $0x18] sm:$0xff]  ;;  %vm1289_vm0 = vmmov 0  }
  0x6b   : > { %1259 = vsyncadd (%p1608_p8), [#allocation6], 4294959104  ;;  %399 = vmatprep.mubr.f32.mxu0 %v1287_v0  ;;  %996 = vmatprep.subr.bf16.mxu1 %v1288_v1  ;;  %v270_v4 = vld [vmem:[#allocation5] sm:$0xff]  ;;  %v964_v5 = vpack.c.bf16 %v274_v3, %v271_v2  ;;  %v277_v7 = vld [vmem:[#allocation5 + $0x38] sm:$0xff]  ;;  %vm546_vm1 = vcmask 64512   ;;  %s843_s12 = sshll.u32 %s1342_s22, 7 }
  0x6c   : > { %v280_v8 = vld [vmem:[#allocation5 + $0x50] sm:$0xff]  ;;  %v966_v9 = vpack.c.bf16 %v273_v6, %v270_v4  ;;  %v279_v12 = vld [vmem:[#allocation5 + $0x48] sm:$0xff]  ;;  %v286_v14 = vld [vmem:[#allocation5 + $0x80] sm:$0xff]  ;;  %916 = vmatprep.mubr.msk.f32.mxu1 %vm1289_vm0, %v1287_v0  ;;  %s268_s13 = scalar_lea.vmem [#allocation8], %s836_s15  ;;  %s1546_s8 = scalar_lea.hbm %s1595_s5, %s843_s12 }
  0x6d   : > { %v968_v10 = vpack.c.bf16 %v280_v8, %v277_v7  ;;  %v276_v11 = vld [vmem:[#allocation5 + $0x30] sm:$0xff]  ;;  %v283_v13 = vld [vmem:[#allocation5 + $0x68] sm:$0xff]  ;;  %965 = vmatprep.subr.bf16.mxu0 %v964_v5  ;;  %v282_v17 = vld [vmem:[#allocation5 + $0x60] sm:$0xff]  ;;  %s739_s7 = sshll.u32 %s268_s13, 4  ;;  %s726_s9 = scalar_lea.sflag [#allocation4], %s1490_s14  ;;  %s1548_s7 = int_to_ptr.vmem [resolvable:$true] %s739_s7 }
  0x6e   : > { %967 = vmatpush1.bf16.msra.mxu0 %v966_v9  ;;  %v970_v15 = vpack.c.bf16 %v279_v12, %v276_v11  ;;  %v972_v16 = vpack.c.bf16 %v286_v14, %v283_v13  ;;  %v285_v18 = vld [vmem:[#allocation5 + $0x78] sm:$0xff]  ;;  %v292_v20 = vld [vmem:[#allocation5 + $0xb0] sm:$0xff]  ;;  %v291_v24 = vld [vmem:[#allocation5 + $0xa8] sm:$0xff]  ;;  %v320_v13 = vlaneseq  ;;  %s1208_s11 = scalar_lea.vmem %s1548_s7, 128  ;;  %p1609_p0 = scmp.ne.s32.totalorder %s1604_s30, 0 }
  0x6f   : > { %969 = vmatprep.subr.bf16.mxu0 %v968_v10  ;;  %v289_v19 = vld [vmem:[#allocation5 + $0x98] sm:$0xff]  ;;  %v974_v21 = vpack.c.bf16 %v285_v18, %v282_v17  ;;  %v288_v23 = vld [vmem:[#allocation5 + $0x90] sm:$0xff]  ;;  %v295_v25 = vld [vmem:[#allocation5 + $0xc8] sm:$0xff]  ;;  %p1209_p11 = scmp.ne.s32.totalorder %s1548_s7, %s1208_s11  ;;  %s1290_s22 = smov [#allocation8]  }
  0x70   : > { %v976_v22 = vpack.c.bf16 %v292_v20, %v289_v19  ;;  %v298_v26 = vld [vmem:[#allocation5 + $0xe0] sm:$0xff]  ;;  %v272_v27 = vld [vmem:[#allocation5 + $0x10] sm:$0xff]  ;;  %v275_v28 = vld [vmem:[#allocation5 + $0x28] sm:$0xff]  ;;  %v978_v30 = vpack.c.bf16 %v291_v24, %v288_v23  ;;  %v321_v14 = vshrl.u32 %v320_v13, 7  ;;  %s1212_s15 = sshll.u32 %s1290_s22, 4  ;;  %s1213_s15 = int_to_ptr.vmem [resolvable:$false] %s1212_s15 }
  0x71   : > { %v278_v29 = vld [vmem:[#allocation5 + $0x40] sm:$0xff]  ;;  %v997_v31 = vpack.c.bf16 %v275_v28, %v272_v27  ;;  %v281_v32 = vld [vmem:[#allocation5 + $0x58] sm:$0xff]  ;;  %v980_v33 = vpack.c.bf16 %v298_v26, %v295_v25  ;;  %v304_v37 = vld [vmem:[#allocation5 + $0x110] sm:$0xff]  ;;  %p1210_p1 = pnand %p1209_p11, %p1609_p0  ;;  %s1214_s17 = scalar_lea.vmem %s1213_s15, 256 }
  0x72   : > { %971 = vmatpush1.bf16.msra.mxu0 %v970_v15  ;;  %v294_v34 = vld [vmem:[#allocation5 + $0xc0] sm:$0xff]  ;;  %v297_v35 = vld [vmem:[#allocation5 + $0xd8] sm:$0xff]  ;;  %v1000_v38 = vpack.c.bf16 %v281_v32, %v278_v29  ;;  %v284_v39 = vld [vmem:[#allocation5 + $0x70] sm:$0xff]  ;;  %v326_v15 = vsub.s32 1, %v321_v14  ;;  %v322_v17 = vsub.s32 0, %v321_v14  ;;  %v330_v24 = vsub.s32 2, %v321_v14  ;;  %p1215_p5 = scmp.lt.s32.totalorder %s1548_s7, %s1213_s15  ;;  %p1216_p9 = scmp.lt.s32.totalorder %s1214_s17, %s1208_s11 }
  0x73   : > { %973 = vmatprep.subr.bf16.mxu0 %v972_v16  ;;  %v301_v36 = vld [vmem:[#allocation5 + $0xf8] sm:$0xff]  ;;  %998 = vmatpush3.bf16.msra.mxu1 %v997_v31  ;;  %v287_v40 = vld [vmem:[#allocation5 + $0x88] sm:$0xff]  ;;  %v982_v41 = vpack.c.bf16 %v297_v35, %v294_v34  ;;  %v300_v43 = vld [vmem:[#allocation5 + $0xf0] sm:$0xff]  ;;  %p1211_p3 = pneg %p1210_p1 }
  0x74   : > { %999 = vmatprep.subr.bf16.mxu1 %v1288_v1  ;;  %v984_v42 = vpack.c.bf16 %v304_v37, %v301_v36  ;;  %v303_v44 = vld [vmem:[#allocation5 + $0x108] sm:$0xff]  ;;  %v310_v46 = vld [vmem:[#allocation5 + $0x140] sm:$0xff]  ;;  %v1003_v47 = vpack.c.bf16 %v287_v40, %v284_v39  ;;  %v293_v49 = vld [vmem:[#allocation5 + $0xb8] sm:$0xff]  ;;  %p1217_p12 = por %p1216_p9, %p1215_p5 }
  0x75   : > { %v307_v45 = vld [vmem:[#allocation5 + $0x128] sm:$0xff]  ;;  %v290_v48 = vld [vmem:[#allocation5 + $0xa0] sm:$0xff]  ;;  %v986_v50 = vpack.c.bf16 %v303_v44, %v300_v43  ;;  %v309_v53 = vld [vmem:[#allocation5 + $0x138] sm:$0xff] }
  0x76   : > { %975 = vmatpush1.bf16.msra.mxu0 %v974_v21  ;;  %v988_v51 = vpack.c.bf16 %v310_v46, %v307_v45  ;;  %v306_v52 = vld [vmem:[#allocation5 + $0x120] sm:$0xff]  ;;  %v313_v54 = vld [vmem:[#allocation5 + $0x158] sm:$0xff]  ;;  %v316_v55 = vld [vmem:[#allocation5 + $0x170] sm:$0xff]  ;;  %v1006_v56 = vpack.c.bf16 %v293_v49, %v290_v48  ;;  %p1218_p2 = pnand %p1217_p12, %p1211_p3 }
  0x77   : > { %977 = vmatprep.subr.bf16.mxu0 %v976_v22  ;;  %1001 = vmatpush3.bf16.msra.mxu1 %v1000_v38  ;;  %v296_v57 = vld [vmem:[#allocation5 + $0xd0] sm:$0xff]  ;;  %v299_v58 = vld [vmem:[#allocation5 + $0xe8] sm:$0xff]  ;;  %v990_v59 = vpack.c.bf16 %v309_v53, %v306_v52  ;;  %v992_v60 = vpack.c.bf16 %v316_v55, %v313_v54  ;;  %v302_v2 = vld [vmem:[#allocation5 + $0x100] sm:$0xff] }
  0x78   : > { %1002 = vmatprep.subr.bf16.mxu1 %v1288_v1  ;;  %v312_v61 = vld [vmem:[#allocation5 + $0x150] sm:$0xff]  ;;  %v315_v62 = vld [vmem:[#allocation5 + $0x168] sm:$0xff]  ;;  %v1009_v63 = vpack.c.bf16 %v299_v58, %v296_v57  ;;  %v305_v3 = vld [vmem:[#allocation5 + $0x118] sm:$0xff] }
  0x79   : > { %v994_v4 = vpack.c.bf16 %v315_v62, %v312_v61  ;;  %v1012_v5 = vpack.c.bf16 %v305_v3, %v302_v2  ;;  %v308_v6 = vld [vmem:[#allocation5 + $0x130] sm:$0xff]  ;;  %v311_v7 = vld [vmem:[#allocation5 + $0x148] sm:$0xff]  ;;  %v314_v10 = vld [vmem:[#allocation5 + $0x160] sm:$0xff] }
  0x7a   : > { %979 = vmatpush1.bf16.msra.mxu0 %v978_v30  ;;  %v269_v8 = vld [vmem:[%s1496_s23] sm:$0xff]  ;;  %v1015_v9 = vpack.c.bf16 %v311_v7, %v308_v6  ;;  %v632_v37 = vld [vmem:[#allocation7 + $0x8] sm:$0xff]  ;;  %v639_v48 = vld [vmem:[#allocation7 + $0x40] sm:$0xff] }
  0x7b   : > { %981 = vmatprep.subr.bf16.mxu0 %v980_v33  ;;  %1004 = vmatpush3.bf16.msra.mxu1 %v1003_v47  ;;  %v317_v11 = vld [vmem:[#allocation5 + $0x178] sm:$0xff]  ;;  %v318_v16 = vld [vmem:[%s1592_s2] sm:$0x7]  ;;  %v636_v43 = vld [vmem:[#allocation7 + $0x28] sm:$0xff] }
  0x7c   : > { %1005 = vmatprep.subr.bf16.mxu1 %v1288_v1  ;;  %v1018_v12 = vpack.c.bf16 %v317_v11, %v314_v10  ;;  %v327_v18 = vrot.slane %v318_v16, %v326_v15  ;;  %v323_v20 = vrot.slane %v318_v16, %v322_v17  ;;  %v331_v25 = vrot.slane %v318_v16, %v330_v24  ;;  %v633_v38 = vld [vmem:[#allocation7 + $0x10] sm:$0xff]  ;;  %v634_v40 = vld [vmem:[#allocation7 + $0x18] sm:$0xff]  ;;  %v640_v49 = vld [vmem:[#allocation7 + $0x48] sm:$0xff] }
  0x7d   : > { %v637_v45 = vld [vmem:[#allocation7 + $0x30] sm:$0xff]  ;;  %v638_v46 = vld [vmem:[#allocation7 + $0x38] sm:$0xff]  ;;  %v643_v54 = vld [vmem:[#allocation7 + $0x60] sm:$0xff] }
  0x7e   : > { %983 = vmatpush1.bf16.msra.mxu0 %v982_v41  ;;  %v1024_v41 = vpack.c.bf16 %v634_v40, %v633_v38  ;;  %v1030_v47 = vpack.c.bf16 %v638_v46, %v637_v45  ;;  %v642_v52 = vld [vmem:[#allocation7 + $0x58] sm:$0xff]  ;;  %v644_v55 = vld [vmem:[#allocation7 + $0x68] sm:$0xff]  ;;  %v645_v57 = vld [vmem:[#allocation7 + $0x70] sm:$0xff] }
  0x7f   : > { %985 = vmatprep.subr.bf16.mxu0 %v984_v42  ;;  %1007 = vmatpush3.bf16.msra.mxu1 %v1006_v56  ;;  %v635_v42 = vld [vmem:[#allocation7 + $0x20] sm:$0xff]  ;;  %v1039_v56 = vpack.c.bf16 %v644_v55, %v643_v54  ;;  %v646_v58 = vld [vmem:[#allocation7 + $0x78] sm:$0xff]  ;;  %v841_v3 = vld [vmem:[%s1594_s4] ss:$0 sm:$0xff] }
  0x80   : > { %1008 = vmatprep.subr.bf16.mxu1 %v1288_v1  ;;  %v1027_v44 = vpack.c.bf16 %v636_v43, %v635_v42 }
  0x82   : > { %987 = vmatpush1.bf16.msra.mxu0 %v986_v50  ;;  %v1033_v50 = vpack.c.bf16 %v640_v49, %v639_v48 }
  0x83   : > { %989 = vmatprep.subr.bf16.mxu0 %v988_v51  ;;  %1010 = vmatpush3.bf16.msra.mxu1 %v1009_v63  ;;  %v641_v51 = vld [vmem:[#allocation7 + $0x50] sm:$0xff] }
  0x84   : > { %1011 = vmatprep.subr.bf16.mxu1 %v1288_v1  ;;  %v1036_v53 = vpack.c.bf16 %v642_v52, %v641_v51 }
  0x86   : > { %991 = vmatpush1.bf16.msra.mxu0 %v990_v59  ;;  %v1042_v59 = vpack.c.bf16 %v646_v58, %v645_v57 }
  0x87   : > { %993 = vmatprep.subr.bf16.mxu0 %v992_v60  ;;  %1013 = vmatpush3.bf16.msra.mxu1 %v1012_v5 }
  0x88   : > { %1014 = vmatprep.subr.bf16.mxu1 %v1288_v1 }
  0x8a   : > { %995 = vmatpush1.bf16.msra.mxu0 %v994_v4 }
  0x8b   : > { %1020 = vmatprep.subr.bf16.mxu0 %v1288_v1  ;;  %1016 = vmatpush3.bf16.msra.mxu1 %v1015_v9 }
  0x8c   : > { %1017 = vmatprep.subr.bf16.mxu1 %v1288_v1 }
  0x8d   : > { %400 = vmatmul.mubr.f32.vlgmr.msra.gmra.mrb[0].mxu0 %v269_v8 }
  0x8e   : > { %961 = vmatprep.mubr.msk.f32.mxu0 %vm1289_vm0, %v1287_v0 }
  0x8f   : > { %1019 = vmatpush3.bf16.msra.mxu1 %v1018_v12 }
  0x90   : > { %919 = vmatprep.subr.mxu1 %v1287_v0 }
  0x92   : > { %917 = vmatmul.mubr.f32.vlgmr.msra.gmra.mrb[0].mxu1 %v269_v8 }
  0x93   : > { %921 = vmatprep.mubr.msk.f32.mxu1 %vm1289_vm0, %v1287_v0 }
 0x160   : > { %v401_v19 = vpop.f32.mrb[0].mxu0 }
 0x161   : > { %v403_v21 = vpop.f32.mrb[1].mxu0  ;;  %v402_v23 = vadd.f32 %v401_v19, %v323_v20 }
 0x162   : > { %v404_v22 = vadd.f32 %v403_v21, %v327_v18 }
 0x164   : > { %920 = vmatpush3.xpose.msra.mxu1 %v404_v22 }
 0x165   : > { %924 = vmatprep.subr.mxu1 %v1287_v0  ;;  %v472_v26 = vpop.f32.mrb[0].mxu1 }
 0x166   : > { %v473_v27 = vadd.f32 %v472_v26, %v331_v25  ;;  %v918_v28 = vpop.f32.mrb[1].mxu1 }
 0x167   : > { %922 = vmatmul.mubr.f32.vlgmr.msra.gmra.mrb[2].mxu1 %v402_v23 }
 0x168   : > { %926 = vmatprep.mubr.msk.f32.mxu1 %vm1289_vm0, %v1287_v0  ;;  %925 = vmatpush3.msra.mxu1 %v473_v27  ;;  %v631_v0 = vld [vmem:[#allocation7] sm:$0xff] }
 0x169   : > { %v1021_v39 = vpack.c.bf16 %v632_v37, %v631_v0 }
 0x16b   : > { %1022 = vmatpush3.bf16.msra.mxu0 %v1021_v39 }
 0x16c   : > { %1023 = vmatprep.subr.bf16.mxu0 %v1288_v1 }
 0x16f   : > { %1025 = vmatpush3.bf16.msra.mxu0 %v1024_v41 }
 0x170   : > { %1026 = vmatprep.subr.bf16.mxu0 %v1288_v1 }
 0x173   : > { %1028 = vmatpush3.bf16.msra.mxu0 %v1027_v44 }
 0x174   : > { %1029 = vmatprep.subr.bf16.mxu0 %v1288_v1 }
 0x177   : > { %1031 = vmatpush3.bf16.msra.mxu0 %v1030_v47 }
 0x178   : > { %1032 = vmatprep.subr.bf16.mxu0 %v1288_v1 }
 0x17b   : > { %1034 = vmatpush3.bf16.msra.mxu0 %v1033_v50 }
 0x17c   : > { %1035 = vmatprep.subr.bf16.mxu0 %v1288_v1 }
 0x17f   : > { %1037 = vmatpush3.bf16.msra.mxu0 %v1036_v53 }
 0x180   : > { %1038 = vmatprep.subr.bf16.mxu0 %v1288_v1 }
 0x183   : > { %1040 = vmatpush3.bf16.msra.mxu0 %v1039_v56 }
 0x184   : > { %1041 = vmatprep.subr.bf16.mxu0 %v1288_v1 }
 0x187   : > { %1043 = vmatpush3.bf16.msra.mxu0 %v1042_v59 }
 0x23a   : > { %v542_v29 = vpop.f32.mrb[2].mxu1 }
 0x23b   : > { %v923_v30 = vpop.f32.mrb[3].mxu1  ;;  %v547_v31 = vsel %vm546_vm1, %v542_v29, -inf }
 0x23c   : > { %548 = vmax.xlane.f32.xlu0 %v547_v31 }
 0x2c9   : > { %v549_v32 = vpop.xlane.xlu0 %548 }
 0x2ca   : > { %v550_v33 = vsub.f32 %v542_v29, %v549_v32 }
 0x2cc   : > { %v551_v34 = vmul.f32 1.442695, %v550_v33 }
 0x2ce   : > { %1118 = vpow2.f32 %v551_v34 }
 0x2d8   : > { %v1119_v35 = vpop.eup %1118 }
 0x2d9   : > { %927 = vmatmul.mubr.msk.f32.vlgmr.msra.gmra.mrb[4].mxu1 %vm546_vm1, %v1119_v35  ;;  %v553_v36 = vsel %vm546_vm1, %v1119_v35, 0.0 }
 0x2da   : > { %554 = vadd.xlane.f32.xlu0 %v553_v36 }
 0x367   : > { %v555_v60 = vpop.xlane.xlu0 %554 }
 0x368   : > { %1120 = vrcp.f32 %v555_v60 }
 0x372   : > { %v1121_v61 = vpop.eup %1120 }
 0x3ac   : > { %v625_v62 = vpop.f32.mrb[4].mxu1 }
 0x3ad   : > { %v630_v63 = vmul.f32 %v1121_v61, %v625_v62  ;;  %v928_v2 = vpop.f32.mrb[5].mxu1 }
 0x3af   : > { %962 = vmatmul.mubr.f32.vlgmr.msra.gmra.mrb[2].mxu0 %v630_v63 }
 0x482   : > { %v720_v1 = vpop.f32.mrb[2].mxu0 }
 0x483   : > { %v721_v4 = vadd.f32 %v841_v3, %v720_v1  ;;  %v963_v5 = vpop.f32.mrb[3].mxu0 }
 0x485   : > { %724 = vst [vmem:[%s268_s13] sm:$0xff] %v721_v4 }
 0x486   : > { %1221 = shalt.err (!%p1218_p2)
}
 0x487   : > { %s1222_s14 = scalar_lea.hbm %s1546_s8, 128  ;;  %s1226_s26 = scalar_lea.hbm %s1595_s5, 256 }
 0x488   : > { %p1223_p13 = scmp.ne.s32.totalorder %s1546_s8, %s1222_s14  ;;  %p1227_p4 = scmp.lt.u32.totalorder %s1546_s8, %s1595_s5 }
 0x489   : > { %p1228_p7 = scmp.lt.u32.totalorder %s1226_s26, %s1222_s14  ;;  %p1230_p11 = scmp.lt.u32.totalorder %s1222_s14, %s1546_s8 }
 0x48a   : > { %p1224_p6 = pnand %p1223_p13, %p1609_p0 }
 0x48b   : > { %p1229_p8 = por %p1228_p7, %p1227_p4 }
 0x48c   : > { %p1225_p10 = pneg %p1224_p6 }
 0x48d   : > { %p1231_p1 = por %p1230_p11, %p1229_p8 }
 0x48f   : > { %p1232_p3 = pnand %p1231_p1, %p1225_p10 }
 0x491   : > { %1235 = shalt.err (!%p1232_p3)
}
 0x492   : > { %1054 = dma.vmem_to_hbm [thread:$0]  (%p1609_p0), %s1548_s7, 128, %s1546_s8, %s726_s9  }
 0x493 PF: > { %s751_s12 = sand.u32 1, %s1266_s18   ;;  %p1610_p5 = scmp.ne.s32.totalorder %s1600_s25, 0 }
 0x494   : > { %p1611_p9 = scmp.ge.s32.totalorder %s1278_s21, 2  ;;  %s752_s13 = scalar_lea.sflag [#allocation4], %s751_s12 }
 0x496   : > { %p1068_p12 = pnand %p1611_p9, %p1610_p5 }
 0x498   : > { %1261 = dma.done.wait (!%p1068_p12), %s752_s13, 128  }
 0x499   : > { %1263 = vsyncadd (!%p1068_p12), %s752_s13, 4294967168  ;;  %p19_p2 = scmp.ge.s32.totalorder %s1431_s16, 4   ;;  %s1612_s18 = smov %s1270_s19 }
 0x49a   : > { %s1613_s19 = smov %s1274_s20  ;;  %s1614_s20 = smov %s1440_s27 }
 0x49b   : > { %s1615_s21 = smov %s1431_s16  ;;  %21 = sbr.rel (!%p19_p2) target bundleno = 6 (0x6), region = 93 }
 0x4a2   :  { %757 = vsyncpa [#allocation3], 1 }
 0x4a3   :  { %759 = vsyncpa [#allocation3 + $0x1], 1 }
 0x4a4   :  { %760 = vsyncpa [#allocation6], 1 }
 0x4a5   :  { %761 = vsyncpa [#allocation4], 1 }
 0x4a6   :  { %763 = vsyncpa [#allocation4 + $0x1], 1 }

</bundles_post_ra>
